<compile_context>
chip_gen: v7x
topology: tpu7x:2x2x1
jax: 0.10.0
libtpu: 0.0.40
codegen_flags: <defaults>
</compile_context>

<pallas_src>
import jax
import jax.numpy as jnp
from jax.experimental import pallas as pl
from jax.experimental.pallas import tpu as pltpu


def _copy_kernel(x_ref, o_ref):
    # Straight dtype-preserving copy of the current tile.
    o_ref[...] = x_ref[...]


def _round_up(v: int, m: int) -> int:
    return ((v + m - 1) // m) * m


def _choose_copy_shape(total: int):
    """Pick a lane-dense 2-D view (rows2, cols2) with rows2*cols2 == total.

    Columns come from a bounded candidate list (<= 8192 elems), so a row is
    at most a few tens of KiB and the 8-row sublane floor can never blow up
    the block size.  Returns None if no multiple-of-128 divisor exists.
    """
    for cols in (1024, 512, 256, 128, 2048, 4096, 8192):
        if total % cols == 0:
            return total // cols, cols
    return None


def _choose_row_tile(rows2: int, cols2: int, itemsize: int,
                     target_block_bytes: int = 2 << 20) -> int:
    """Rows per block: ~2 MiB blocks, multiple of 8, or the full extent.

    If everything fits in a single block but there are enough rows, split
    into (at least) 2 tiles so both v7x TensorCores get work.
    """
    tr = max(8, target_block_bytes // (cols2 * itemsize))
    tr = (tr // 8) * 8
    if tr >= rows2:
        if rows2 >= 16:
            return _round_up(pl.cdiv(rows2, 2), 8)
        return rows2  # full extent -> always a legal block, even if < 8 rows
    return tr


def _pallas_identity_copy(x2d: jax.Array, block_shape, grid, index_map,
                          block_bytes: int) -> jax.Array:
    vmem_limit = max(8 << 20, 4 * block_bytes + (2 << 20))
    return pl.pallas_call(
        _copy_kernel,
        out_shape=jax.ShapeDtypeStruct(x2d.shape, x2d.dtype),
        grid=grid,
        in_specs=[pl.BlockSpec(block_shape, index_map)],
        out_specs=pl.BlockSpec(block_shape, index_map),
        compiler_params=pltpu.CompilerParams(
            dimension_semantics=("parallel",),   # shards across v7x's 2 TCs
            vmem_limit_bytes=vmem_limit,
        ),
    )(x2d)


def flatten_forward(x: jax.Array, out_features: int,
                    *, materialize: bool = False) -> jax.Array:
    """Equivalent of `x.view(-1, out_features)`.

    Default path is metadata-only (zero HBM traffic).  With
    `materialize=True`, the data is round-tripped through a tiled, pipelined
    Pallas identity-copy kernel.
    """
    total = x.size
    assert total % out_features == 0, \
        "out_features must evenly divide the total number of elements"
    rows = total // out_features

    if not materialize:
        # Flatten on contiguous data is a free re-view; no kernel needed.
        return jnp.reshape(x, (rows, out_features))

    itemsize = jnp.dtype(x.dtype).itemsize
    shape2d = _choose_copy_shape(total)

    if shape2d is not None:
        # Lane-dense 2-D view; tile along rows.
        rows2, cols2 = shape2d
        x2d = jnp.reshape(x, (rows2, cols2))           # metadata-only
        tr = _choose_row_tile(rows2, cols2, itemsize)
        grid = (pl.cdiv(rows2, tr),)
        out2d = _pallas_identity_copy(
            x2d, (tr, cols2), grid, lambda i: (i, 0),
            block_bytes=tr * cols2 * itemsize)
    else:
        # No multiple-of-128 divisor: keep a flat (1, total) view and tile the
        # column axis with 128-multiple blocks (ragged, masked last block).
        x2d = jnp.reshape(x, (1, total))               # metadata-only
        tile = max(128, (((2 << 20) // itemsize) // 128) * 128)
        if tile >= total:
            if total >= 256:
                tile = _round_up(pl.cdiv(total, 2), 128)   # >= 2 grid steps
            else:
                tile = total                                # tiny: full extent
        grid = (pl.cdiv(total, tile),)
        out2d = _pallas_identity_copy(
            x2d, (1, tile), grid, lambda i: (0, i),
            block_bytes=tile * itemsize)

    # Metadata-only re-view back to the module's output shape.
    return jnp.reshape(out2d, (rows, out_features))


if __name__ == "__main__":
    key = jax.random.PRNGKey(0)

    # Case 1: default (metadata-only) path — the recommended way to run Flatten.
    B, C, H, W = 2, 4, 16, 16
    out_features = C * H * W  # 1024 -> output shape (2, 1024)
    x = jax.random.normal(key, (B, C, H, W), dtype=jnp.float32)
    y = jax.block_until_ready(flatten_forward(x, out_features))
    y_ref = jnp.reshape(x, (-1, out_features))
    assert y.shape == (B, out_features) and y.dtype == x.dtype
    assert bool(jnp.array_equal(y, y_ref))

    # Case 2: materialized Pallas copy, lane-dense path.
    y_mat = jax.block_until_ready(
        flatten_forward(x, out_features, materialize=True))
    assert y_mat.shape == (B, out_features) and y_mat.dtype == x.dtype
    assert bool(jnp.array_equal(y_mat, y_ref))

    # Case 3: materialized copy, out_features with no multiple-of-128 divisor
    # (exercises the tiled fallback path).
    B2, C2_, H2, W2 = 2, 3, 5, 7
    out_features2 = C2_ * H2 * W2  # 105
    x2 = jax.random.normal(jax.random.PRNGKey(1), (B2, C2_, H2, W2),
                           dtype=jnp.float32)
    y2 = jax.block_until_ready(
        flatten_forward(x2, out_features2, materialize=True))
    y2_ref = jnp.reshape(x2, (-1, out_features2))
    assert y2.shape == (B2, out_features2)
    assert bool(jnp.array_equal(y2, y2_ref))

    # Case 4: materialized copy with a multi-step (>= 2) parallel grid, so the
    # v7x two-TensorCore split path is exercised.
    B3, C3, H3, W3 = 8, 4, 32, 32
    out_features3 = C3 * H3 * W3  # 4096
    x3 = jax.random.normal(jax.random.PRNGKey(2), (B3, C3, H3, W3),
                           dtype=jnp.float32)
    y3 = jax.block_until_ready(
        flatten_forward(x3, out_features3, materialize=True))
    y3_ref = jnp.reshape(x3, (-1, out_features3))
    assert y3.shape == (B3, out_features3)
    assert bool(jnp.array_equal(y3, y3_ref))

    print("KERNEL_OK")
</pallas_src>

<mosaic_0001>
module attributes {stable_mosaic.version = 11 : i64} {
  func.func @_copy_kernel(%arg0: i32, %arg1: memref<2x1024xf32, #tpu.memory_space<vmem>>, %arg2: memref<2x1024xf32, #tpu.memory_space<vmem>>) attributes {dimension_semantics = [#tpu.dimension_semantics<parallel>], iteration_bounds = array<i64: 1>, scalar_prefetch = 0 : i64, scratch_operands = 0 : i64, tpu.core_type = #tpu.core_type<tc>, window_params = [{transform_indices = @transform_0, window_bounds = array<i64: 2, 1024>}, {transform_indices = @transform_1, window_bounds = array<i64: 2, 1024>}]} {
    %c0 = arith.constant 0 : index
    %c0_0 = arith.constant 0 : index
    %0 = vector.load %arg1[%c0, %c0_0] : memref<2x1024xf32, #tpu.memory_space<vmem>>, vector<2x1024xf32>
    %c0_1 = arith.constant 0 : index
    %c0_2 = arith.constant 0 : index
    %1 = vector.load %arg2[%c0_1, %c0_2] : memref<2x1024xf32, #tpu.memory_space<vmem>>, vector<2x1024xf32>
    tpu.vector_store %arg2[%c0_1, %c0_2], %0 {strides = array<i32>} : memref<2x1024xf32, #tpu.memory_space<vmem>>, vector<2x1024xf32>,
    return
  }
  func.func @transform_0(%arg0: i32) -> (i32, i32) {
    %c0_i32 = arith.constant 0 : i32
    %c0_i32_0 = arith.constant 0 : i32
    return %arg0, %c0_i32 : i32, i32
  }
  func.func @transform_1(%arg0: i32) -> (i32, i32) {
    %c0_i32 = arith.constant 0 : i32
    %c0_i32_0 = arith.constant 0 : i32
    return %arg0, %c0_i32 : i32, i32
  }
}

</mosaic_0001>

<bundles_post_ra>
// kernel: tpu_custom_call.1
= control target key start
LH: loop header
LB: loop body
LE: loop exit
PB: predicated region body
PF: predicated region fallthrough
CT: control target
= control target key end

     0   :  { %6 = vsyncpa [#allocation3], 0  ;;  %s126_s0 = inlined_call_operand.hbm [shape: f32[2,1024], index: 0, kind: input, shape index: {}]   ;;  %s127_s1 = inlined_call_operand.hbm [shape: f32[2,1024], index: 1, kind: output, shape index: {}]  }
   0x1   :  { %7 = vsyncpa [#allocation4], 0  ;;  %s90_s6 = smov [#allocation2]   ;;  %s42_s10 = scalar_lea.hbm %s126_s0, 256 }
   0x2   :  { %s14_s7 = sshll.u32 %s90_s6, 4  ;;  %p43_p0 = scmp.ne.s32.totalorder %s126_s0, %s42_s10  ;;  %s15_s7 = int_to_ptr.vmem [resolvable:$true] %s14_s7 }
   0x3   :  { %p46_p1 = scmp.lt.u32.totalorder %s42_s10, %s126_s0 }
   0x5   :  { %p48_p2 = pnand %p46_p1, %p43_p0 }
   0x7   :  { %51 = shalt.err (!%p48_p2)
}
   0x8   :  { %s52_s15 = scalar_lea.vmem %s15_s7, 256  ;;  %p57_p4 = scmp.lt.s32.totalorder %s15_s7, %s15_s7 }
   0x9   :  { %p53_p3 = scmp.ne.s32.totalorder %s15_s7, %s52_s15  ;;  %p58_p5 = scmp.lt.s32.totalorder %s52_s15, %s52_s15 }
   0xb   :  { %p59_p6 = por %p58_p5, %p57_p4 }
   0xd   :  { %p60_p7 = pnand %p59_p6, %p53_p3 }
   0xf   :  { %63 = shalt.err (!%p60_p7)
}
  0x10   :  { %17 = dma.hbm_to_vmem [thread:$0]  %s126_s0, 256, %s15_s7, [#allocation3]  }
  0x11   :  { %86 = dma.done.wait [#allocation3], 256  }
  0x12   :  { %87 = vsyncadd [#allocation3], 4294967040  ;;  %s91_s18 = smov [#allocation5]   ;;  %v21_v0 = vld [vmem:[#allocation2] sm:$0xff]  ;;  %v22_v1 = vld [vmem:[#allocation2 + $0x8] sm:$0xff] }
  0x13   :  { %s31_s19 = sshll.u32 %s91_s18, 4  ;;  %23 = vst [vmem:[#allocation5] sm:$0xff] %v21_v0  ;;  %24 = vst [vmem:[#allocation5 + $0x8] sm:$0xff] %v22_v1  ;;  %s32_s19 = int_to_ptr.vmem [resolvable:$true] %s31_s19 }
  0x14   :  { %s64_s20 = scalar_lea.vmem %s32_s19, 256  ;;  %p69_p9 = scmp.lt.s32.totalorder %s32_s19, %s32_s19 }
  0x15   :  { %p65_p8 = scmp.ne.s32.totalorder %s32_s19, %s64_s20  ;;  %p70_p10 = scmp.lt.s32.totalorder %s64_s20, %s64_s20 }
  0x17   :  { %p71_p11 = por %p70_p10, %p69_p9 }
  0x19   :  { %p72_p12 = pnand %p71_p11, %p65_p8 }
  0x1b   :  { %75 = shalt.err (!%p72_p12)
}
  0x1c   :  { %s76_s0 = scalar_lea.hbm %s127_s1, 256 }
  0x1d   :  { %p77_p13 = scmp.ne.s32.totalorder %s127_s1, %s76_s0  ;;  %p80_p0 = scmp.lt.u32.totalorder %s76_s0, %s127_s1 }
  0x1f   :  { %p82_p1 = pnand %p80_p0, %p77_p13 }
  0x21   :  { %85 = shalt.err (!%p82_p1)
}
  0x22   :  { %34 = dma.vmem_to_hbm [thread:$0]  %s32_s19, 256, %s127_s1, [#allocation4]  }
  0x23   :  { %88 = dma.done.wait [#allocation4], 256  }
  0x24   :  { %89 = vsyncadd [#allocation4], 4294967040 }
  0x25   :  { %38 = vsyncpa [#allocation3], 1 }
  0x26   :  { %39 = vsyncpa [#allocation4], 1 }

</bundles_post_ra>
